<compile_context>
chip_gen: v5e
topology: v5e:2x2
jax: 0.10.0
libtpu: 0.0.40
codegen_flags: <defaults>
</compile_context>

<pallas_src>
import math
import functools

import jax
import jax.numpy as jnp
import numpy as np
from jax.experimental import pallas as pl
from jax.experimental.pallas import tpu as pltpu


NEG_INF = -9e15  # matches torch's -9000000000000000.0 mask value


def _round_up(x, m):
    return ((x + m - 1) // m) * m


def _local_agg_kernel(h_ref, adj_ref, a_ref, o_ref, *, negative_slope, n_valid):
    # h_ref:   (Bt, Np, Dp)  bf16  block of session embeddings (D zero-padded to Dp)
    # adj_ref: (Bt, Np, Np)  i32   adjacency, edge types in {0..4} (padding rows/cols are 0)
    # a_ref:   (4, Dp)       f32   stacked a_0..a_3 attention vectors (zero-padded)
    # o_ref:   (Bt, Np, Dp)  f32   output
    Bt, Np, Dp = h_ref.shape
    h = h_ref[...]                          # (Bt, Np, Dp) bf16 (reused as RHS of both matmuls)
    adj = adj_ref[...]                      # (Bt, Np, Np) int32
    a = a_ref[...]                          # (4, Dp) f32

    # --- scaled LHS for all 4 edge types: ONE broadcasted multiply, cast once to bf16 ---
    # (multiply in f32 so the elementwise path stays native on v5e; no concat, no extra copies)
    scaled = (h.astype(jnp.float32)[:, None, :, :] * a[None, :, None, :]
              ).astype(jnp.bfloat16)                                   # (Bt, 4, Np, Dp)

    # --- fused attention logits: one (4*Np, Dp) x (Dp, Np) MXU matmul per session ---
    # Np % 8 == 0 -> merging the leading dim into the sublane dim is layout-free.
    # TODO(synk): for realistic (small) N/D, pack several sessions into one larger matmul to
    # better fill the 256-wide MXU on v6e/v7x (diagonal-block extraction needed).
    lhs = scaled.reshape(Bt, 4 * Np, Dp)
    e = jnp.einsum("bkd,bmd->bkm", lhs, h,
                   preferred_element_type=jnp.float32)                 # (Bt, 4*Np, Np) f32
    e = jnp.where(e > 0, e, negative_slope * e)                        # LeakyReLU (f32 VALU)
    e4 = e.reshape(Bt, 4, Np, Np)                                      # leading-dim split: free

    # --- select logits by edge type (leading-dim index, integer compare), then softmax ---
    # Padded columns (>= n_valid) never match adj (they are 0) and start at -inf, so they
    # contribute exactly 0 to the softmax; valid rows with no edges still softmax to a uniform
    # 1/n_valid over the VALID columns, matching the torch reference.
    if Np == n_valid:
        alpha = jnp.full((Bt, Np, Np), NEG_INF, dtype=jnp.float32)
    else:
        col = jax.lax.broadcasted_iota(jnp.int32, (1, 1, Np), 2)
        init = jnp.where(col < n_valid, jnp.float32(NEG_INF), jnp.float32(-jnp.inf))
        alpha = jnp.broadcast_to(init, (Bt, Np, Np))
    for k in range(4):
        alpha = jnp.where(adj == k + 1, e4[:, k], alpha)

    m = jnp.max(alpha, axis=-1, keepdims=True)
    p = jnp.exp(alpha - m)
    s = jnp.sum(p, axis=-1, keepdims=True)
    alpha = p * pl.reciprocal(s, approx=True)

    # --- weighted aggregation: bf16 operands, f32 accumulation ---
    out = jnp.einsum("bnm,bmd->bnd", alpha.astype(jnp.bfloat16), h,
                     preferred_element_type=jnp.float32)               # (Bt, Np, Dp) f32
    o_ref[...] = out.astype(o_ref.dtype)


def _vmem_limit_bytes():
    """Per-generation scoped-VMEM limit: 75% of physical capacity (96 MiB on v5e/v6e, 48 MiB on v7x)."""
    try:
        cap = int(pltpu.get_tpu_info().vmem_capacity_bytes)
    except Exception:
        cap = 64 * 1024 * 1024  # conservative fallback (v7x per-TC VMEM)
    return (cap * 3) // 4


def _auto_block_b(B, Np, Dp, vmem_limit):
    """Pick block_b from a per-session byte estimate so blocks + temporaries fit comfortably."""
    io = (2 * Np * Dp * 2          # h block, bf16, double-buffered
          + 2 * Np * Np * 4        # adj block, i32, double-buffered
          + 2 * Np * Dp * 4)       # out block, f32, double-buffered
    tmp = (4 * Np * Dp * 2         # scaled LHS, bf16
           + Np * Dp * 4           # transient f32 upcast of h for the scale multiply
           + 4 * Np * Np * 4       # logits, f32
           + 2 * Np * Np * 4       # alpha / exp temporaries, f32
           + Np * Np * 2           # alpha, bf16 matmul operand
           + Np * Dp * 4)          # f32 accumulator before the output cast
    per_session = io + tmp
    budget = vmem_limit // 2       # headroom for Mosaic scratch / regalloc
    return int(max(1, min(B, 256, budget // max(per_session, 1))))


def local_aggregator(h, adj, a_stack, *, negative_slope=0.2, block_b=None):
    """h: (B, N, D) f32, adj: (B, N, N) int, a_stack: (4, D) f32 -> (B, N, D) f32."""
    B, N, D = h.shape
    Dp = _round_up(D, 128)          # lane-dense last dim for h / output (biggest single lever)
    Np = _round_up(N, 8)            # sublane-aligned session length (free 4D<->3D merges)
    vmem_limit = _vmem_limit_bytes()
    if block_b is None:
        block_b = _auto_block_b(B, Np, Dp, vmem_limit)
    Bp = _round_up(B, block_b)

    # bf16 h halves the dominant HBM->VMEM traffic; zero-padding keeps the math unchanged.
    h = h.astype(jnp.bfloat16)
    if (Bp, Np, Dp) != (B, N, D):
        h = jnp.pad(h, ((0, Bp - B), (0, Np - N), (0, Dp - D)))
    # adj stays i32: values are tiny, but i8 needs (32,128) tiles which is wasteful at small N.
    adj = adj.astype(jnp.int32)
    if (Bp, Np) != (B, N):
        adj = jnp.pad(adj, ((0, Bp - B), (0, Np - N), (0, Np - N)))
    a_stack = a_stack.astype(jnp.float32)
    if Dp != D:
        a_stack = jnp.pad(a_stack, ((0, 0), (0, Dp - D)))

    kernel = functools.partial(_local_agg_kernel,
                               negative_slope=negative_slope, n_valid=N)
    out = pl.pallas_call(
        kernel,
        out_shape=jax.ShapeDtypeStruct((Bp, Np, Dp), jnp.float32),
        grid_spec=pltpu.PrefetchScalarGridSpec(
            num_scalar_prefetch=0,
            grid=(Bp // block_b,),
            in_specs=[
                pl.BlockSpec((block_b, Np, Dp), lambda b: (b, 0, 0)),
                pl.BlockSpec((block_b, Np, Np), lambda b: (b, 0, 0)),
                pl.BlockSpec((4, Dp), lambda b: (0, 0)),
            ],
            out_specs=pl.BlockSpec((block_b, Np, Dp), lambda b: (b, 0, 0)),
        ),
        compiler_params=pltpu.CompilerParams(
            # TODO(synk): on v7x, verify megacore sharding of the batch axis; if not, switch to
            # pltpu.CORE_PARALLEL on this axis.
            dimension_semantics=("parallel",),
            vmem_limit_bytes=vmem_limit,
        ),
    )(h, adj, a_stack)
    return out[:B, :N, :D]


def dual_contrastive_forward(params, inputs, adj, mask_item, item,
                             *, negative_slope=0.2, dropout_local=0.0, block_b=None):
    """Mirrors DualContrastiveModel.forward (eval mode)."""
    # Embedding lookup (glue, plain JAX gather).
    h = params["embedding"][inputs]                       # (B, N, D) f32
    h_local = local_aggregator(h, adj, params["a_stack"],
                               negative_slope=negative_slope, block_b=block_b)
    # F.dropout(h_local, dropout_local, training=self.training): eval mode -> identity.
    # TODO(synk): training-mode dropout (stochastic mask) not applied here.
    return h_local


def init_params(key, num_nodes, dim):
    stdv = 1.0 / math.sqrt(dim)
    k_emb, k_a = jax.random.split(key)
    embedding = jax.random.uniform(k_emb, (num_nodes, dim),
                                   minval=-stdv, maxval=stdv, dtype=jnp.float32)
    # a_0..a_3 are (dim, 1) in the torch module; store them stacked as (4, dim).
    a_stack = jax.random.uniform(k_a, (4, dim),
                                 minval=-stdv, maxval=stdv, dtype=jnp.float32)
    return {"embedding": embedding, "a_stack": a_stack}


def _reference_forward(params, inputs, adj, negative_slope=0.2):
    """Pure-JAX (f32) reference for correctness checking."""
    h = params["embedding"][inputs]                        # (B, N, D)
    a = params["a_stack"]                                  # (4, D)

    def leaky(x):
        return jnp.where(x > 0, x, negative_slope * x)

    es = [leaky(jnp.einsum("bid,bjd->bij", h * a[k][None, None, :], h)) for k in range(4)]
    alpha = jnp.full(adj.shape, NEG_INF, dtype=jnp.float32)
    for k in range(4):
        alpha = jnp.where(adj == k + 1, es[k], alpha)
    alpha = jax.nn.softmax(alpha, axis=-1)
    return jnp.einsum("bij,bjd->bid", alpha, h)


if __name__ == "__main__":
    B, N, D = 6, 8, 32          # batch, session length, hiddenSize (small demo shapes)
    num_nodes = 64
    alpha_slope = 0.2           # args.alpha (LeakyReLU negative slope)

    key = jax.random.PRNGKey(0)
    k_param, k_in, k_adj = jax.random.split(key, 3)

    params = init_params(k_param, num_nodes, D)

    inputs = jax.random.randint(k_in, (B, N), 1, num_nodes, dtype=jnp.int32)
    # adjacency with edge types in {0..4}
    adj = jax.random.randint(k_adj, (B, N, N), 0, 5, dtype=jnp.int32)
    mask_item = jnp.ones((B, N), dtype=jnp.int32)
    item = inputs

    # block_b=4 with B=6 exercises both multi-session blocks and the batch-padding path;
    # D=32 exercises the lane-padding (32 -> 128) path.
    out = dual_contrastive_forward(params, inputs, adj, mask_item, item,
                                   negative_slope=alpha_slope, block_b=4)
    out = jax.block_until_ready(out)

    ref = _reference_forward(params, inputs, adj, negative_slope=alpha_slope)
    # bf16 matmul operands (f32 accumulation) + approx reciprocal -> slightly loose tolerance.
    np.testing.assert_allclose(np.asarray(out), np.asarray(ref), rtol=3e-2, atol=5e-3)

    assert out.shape == (B, N, D)
    print("KERNEL_OK")
</pallas_src>

<mosaic_0001>
module attributes {stable_mosaic.version = 11 : i64} {
  func.func @_local_agg_kernel(%arg0: i32, %arg1: memref<4x8x128xbf16, #tpu.memory_space<vmem>>, %arg2: memref<4x8x8xi32, #tpu.memory_space<vmem>>, %arg3: memref<4x128xf32, #tpu.memory_space<vmem>>, %arg4: memref<4x8x128xf32, #tpu.memory_space<vmem>>) attributes {dimension_semantics = [#tpu.dimension_semantics<parallel>], iteration_bounds = array<i64: 2>, scalar_prefetch = 0 : i64, scratch_operands = 0 : i64, tpu.core_type = #tpu.core_type<tc>, window_params = [{transform_indices = @transform_0, window_bounds = array<i64: 4, 8, 128>}, {transform_indices = @transform_1, window_bounds = array<i64: 4, 8, 8>}, {pipeline_mode = #tpu.pipeline_mode<synchronous>, transform_indices = @transform_2, window_bounds = array<i64: 4, 128>}, {transform_indices = @transform_3, window_bounds = array<i64: 4, 8, 128>}]} {
    %c0 = arith.constant 0 : index
    %c0_0 = arith.constant 0 : index
    %c0_1 = arith.constant 0 : index
    %0 = vector.load %arg1[%c0, %c0_0, %c0_1] : memref<4x8x128xbf16, #tpu.memory_space<vmem>>, vector<4x8x128xbf16>
    %c0_2 = arith.constant 0 : index
    %c0_3 = arith.constant 0 : index
    %c0_4 = arith.constant 0 : index
    %1 = vector.load %arg2[%c0_2, %c0_3, %c0_4] : memref<4x8x8xi32, #tpu.memory_space<vmem>>, vector<4x8x8xi32>
    %c0_5 = arith.constant 0 : index
    %c0_6 = arith.constant 0 : index
    %2 = vector.load %arg3[%c0_5, %c0_6] : memref<4x128xf32, #tpu.memory_space<vmem>>, vector<4x128xf32>
    %3 = arith.extf %0 : vector<4x8x128xbf16> to vector<4x8x128xf32>
    %4 = vector.shape_cast %3 : vector<4x8x128xf32> to vector<4x1x8x128xf32>
    %5 = vector.shape_cast %2 : vector<4x128xf32> to vector<1x4x1x128xf32>
    %6 = vector.broadcast %4 : vector<4x1x8x128xf32> to vector<4x4x8x128xf32>
    %7 = vector.broadcast %5 : vector<1x4x1x128xf32> to vector<4x4x8x128xf32>
    %8 = arith.mulf %6, %7 : vector<4x4x8x128xf32>
    %9 = arith.truncf %8 : vector<4x4x8x128xf32> to vector<4x4x8x128xbf16>
    %10 = vector.shape_cast %9 : vector<4x4x8x128xbf16> to vector<4x32x128xbf16>
    "tpu.trace_start"() <{level = 10 : i32, message = "bkd,bmd->bkm"}> : () -> ()
    %cst = arith.constant dense<0.000000e+00> : vector<4x32x8xf32>
    %11 = tpu.matmul %10, %0, %cst {dimension_numbers = #tpu.dot_dimension_numbers<[2], [2], [1], [1], [0, 0, 0, 1, 1, 1], [0], [0]>} : vector<4x32x128xbf16>, vector<4x8x128xbf16>, vector<4x32x8xf32> -> vector<4x32x8xf32>
    %cst_7 = arith.constant 0.000000e+00 : f32
    "tpu.trace_stop"() : () -> ()
    %12 = vector.broadcast %cst_7 : f32 to vector<4x32x8xf32>
    %13 = arith.cmpf ogt, %11, %12 : vector<4x32x8xf32>
    %cst_8 = arith.constant 2.000000e-01 : f32
    %14 = vector.broadcast %cst_8 : f32 to vector<4x32x8xf32>
    %15 = arith.mulf %14, %11 : vector<4x32x8xf32>
    %16 = arith.select %13, %11, %15 : vector<4x32x8xi1>, vector<4x32x8xf32>
    %17 = vector.shape_cast %16 : vector<4x32x8xf32> to vector<4x4x8x8xf32>
    %cst_9 = arith.constant -9.000000e+15 : f32
    %18 = vector.broadcast %cst_9 : f32 to vector<4x8x8xf32>
    %c1_i32 = arith.constant 1 : i32
    %19 = vector.broadcast %c1_i32 : i32 to vector<4x8x8xi32>
    %20 = arith.cmpi eq, %1, %19 : vector<4x8x8xi32>
    %21 = vector.extract_strided_slice %17 {offsets = [0, 0, 0, 0], sizes = [4, 1, 8, 8], strides = [1, 1, 1, 1]} : vector<4x4x8x8xf32> to vector<4x1x8x8xf32>
    %22 = vector.shape_cast %21 : vector<4x1x8x8xf32> to vector<4x8x8xf32>
    %23 = arith.select %20, %22, %18 : vector<4x8x8xi1>, vector<4x8x8xf32>
    %c2_i32 = arith.constant 2 : i32
    %24 = vector.broadcast %c2_i32 : i32 to vector<4x8x8xi32>
    %25 = arith.cmpi eq, %1, %24 : vector<4x8x8xi32>
    %26 = vector.extract_strided_slice %17 {offsets = [0, 1, 0, 0], sizes = [4, 1, 8, 8], strides = [1, 1, 1, 1]} : vector<4x4x8x8xf32> to vector<4x1x8x8xf32>
    %27 = vector.shape_cast %26 : vector<4x1x8x8xf32> to vector<4x8x8xf32>
    %28 = arith.select %25, %27, %23 : vector<4x8x8xi1>, vector<4x8x8xf32>
    %c3_i32 = arith.constant 3 : i32
    %29 = vector.broadcast %c3_i32 : i32 to vector<4x8x8xi32>
    %30 = arith.cmpi eq, %1, %29 : vector<4x8x8xi32>
    %31 = vector.extract_strided_slice %17 {offsets = [0, 2, 0, 0], sizes = [4, 1, 8, 8], strides = [1, 1, 1, 1]} : vector<4x4x8x8xf32> to vector<4x1x8x8xf32>
    %32 = vector.shape_cast %31 : vector<4x1x8x8xf32> to vector<4x8x8xf32>
    %33 = arith.select %30, %32, %28 : vector<4x8x8xi1>, vector<4x8x8xf32>
    %c4_i32 = arith.constant 4 : i32
    %34 = vector.broadcast %c4_i32 : i32 to vector<4x8x8xi32>
    %35 = arith.cmpi eq, %1, %34 : vector<4x8x8xi32>
    %36 = vector.extract_strided_slice %17 {offsets = [0, 3, 0, 0], sizes = [4, 1, 8, 8], strides = [1, 1, 1, 1]} : vector<4x4x8x8xf32> to vector<4x1x8x8xf32>
    %37 = vector.shape_cast %36 : vector<4x1x8x8xf32> to vector<4x8x8xf32>
    %38 = arith.select %35, %37, %33 : vector<4x8x8xi1>, vector<4x8x8xf32>
    %cst_10 = arith.constant dense<0xFF800000> : vector<4x8xf32>
    %39 = vector.multi_reduction <maximumf>, %38, %cst_10 [2] : vector<4x8x8xf32> to vector<4x8xf32>
    %40 = vector.shape_cast %39 : vector<4x8xf32> to vector<4x8x1xf32>
    %41 = vector.broadcast %40 : vector<4x8x1xf32> to vector<4x8x8xf32>
    %42 = arith.subf %38, %41 : vector<4x8x8xf32>
    %43 = math.exp %42 : vector<4x8x8xf32>
    %cst_11 = arith.constant dense<0.000000e+00> : vector<4x8xf32>
    %44 = vector.multi_reduction <add>, %43, %cst_11 [2] : vector<4x8x8xf32> to vector<4x8xf32>
    %45 = vector.shape_cast %44 : vector<4x8xf32> to vector<4x8x1xf32>
    %46 = tpu.reciprocal %45 {approx = true} : vector<4x8x1xf32> -> vector<4x8x1xf32>
    %47 = vector.broadcast %46 : vector<4x8x1xf32> to vector<4x8x8xf32>
    %48 = arith.mulf %43, %47 : vector<4x8x8xf32>
    %49 = arith.truncf %48 : vector<4x8x8xf32> to vector<4x8x8xbf16>
    "tpu.trace_start"() <{level = 10 : i32, message = "bnm,bmd->bnd"}> : () -> ()
    %cst_12 = arith.constant dense<0.000000e+00> : vector<4x8x128xf32>
    %50 = tpu.matmul %49, %0, %cst_12 {dimension_numbers = #tpu.dot_dimension_numbers<[2], [1], [1], [2], [0, 0, 0, 1, 1, 2], [0], [0]>} : vector<4x8x8xbf16>, vector<4x8x128xbf16>, vector<4x8x128xf32> -> vector<4x8x128xf32>
    "tpu.trace_stop"() : () -> ()
    %c0_13 = arith.constant 0 : index
    %c0_14 = arith.constant 0 : index
    %c0_15 = arith.constant 0 : index
    %51 = vector.load %arg4[%c0_13, %c0_14, %c0_15] : memref<4x8x128xf32, #tpu.memory_space<vmem>>, vector<4x8x128xf32>
    tpu.vector_store %arg4[%c0_13, %c0_14, %c0_15], %50 {strides = array<i32>} : memref<4x8x128xf32, #tpu.memory_space<vmem>>, vector<4x8x128xf32>,
    return
  }
  func.func @transform_0(%arg0: i32) -> (i32, i32, i32) {
    %c0_i32 = arith.constant 0 : i32
    %c0_i32_0 = arith.constant 0 : i32
    %c0_i32_1 = arith.constant 0 : i32
    return %arg0, %c0_i32, %c0_i32_0 : i32, i32, i32
  }
  func.func @transform_1(%arg0: i32) -> (i32, i32, i32) {
    %c0_i32 = arith.constant 0 : i32
    %c0_i32_0 = arith.constant 0 : i32
    %c0_i32_1 = arith.constant 0 : i32
    return %arg0, %c0_i32, %c0_i32_0 : i32, i32, i32
  }
  func.func @transform_2(%arg0: i32) -> (i32, i32) {
    %c0_i32 = arith.constant 0 : i32
    %c0_i32_0 = arith.constant 0 : i32
    %c0_i32_1 = arith.constant 0 : i32
    return %c0_i32, %c0_i32_0 : i32, i32
  }
  func.func @transform_3(%arg0: i32) -> (i32, i32, i32) {
    %c0_i32 = arith.constant 0 : i32
    %c0_i32_0 = arith.constant 0 : i32
    %c0_i32_1 = arith.constant 0 : i32
    return %arg0, %c0_i32, %c0_i32_0 : i32, i32, i32
  }
}

</mosaic_0001>

<bundles_post_ra>
// kernel: tpu_custom_call.1
= control target key start
LH: loop header
LB: loop body
LE: loop exit
PB: predicated region body
PF: predicated region fallthrough
CT: control target
= control target key end

     0   :  { %s1341_s0 = inlined_call_operand.hbm [shape: bf16[8,8,128], index: 0, kind: input, shape index: {}]   ;;  %s1342_s1 = inlined_call_operand.hbm [shape: s32[8,8,8], index: 1, kind: input, shape index: {}]   ;;  %s1343_s2 = inlined_call_operand.hbm [shape: f32[4,128], index: 2, kind: input, shape index: {}]   ;;  %s1344_s3 = inlined_call_operand.hbm [shape: f32[8,8,128], index: 3, kind: output, shape index: {}]  }
   0x1   :  { %1345 = sst [smem:[#allocation14_spill]] %s1341_s0 }
   0x2   :  { %1346 = sst [smem:[#allocation15_spill]] %s1343_s2 }
   0x3   :  { %8 = vsyncpa [#allocation3], 0 }
   0x4   :  { %10 = vsyncpa [#allocation3 + $0x1], 0 }
   0x5   :  { %11 = vsyncpa [#allocation6], 0 }
   0x6   :  { %13 = vsyncpa [#allocation6 + $0x1], 0 }
   0x7   :  { %14 = vsyncpa [#allocation4], 0 }
   0x8   :  { %16 = vsyncpa [#allocation4 + $0x1], 0  ;;  %s1067_s12 = smov 0   ;;  %s1069_s13 = smov 0  }
   0x9   :  { %s1071_s14 = smov 0   ;;  %s1073_s15 = smov 0  }
   0xa LB: > { %s1088_s16 = sadd.s32 4294967295, %s1038_s15   ;;  %s763_s17 = sadd.s32 4294967294, %s1038_s15   ;;  %s1038_s15 = sphi %s1073_s15, %s1362_s15   ;;  %s1034_s14 = sphi %s1071_s14, %s1361_s14   ;;  %s1030_s13 = sphi %s1069_s13, %s1360_s13   ;;  %s1026_s12 = sphi %s1067_s12, %s1359_s12  }
   0xb   : > { %s1092_s18 = sadd.s32 1, %s1038_s15   ;;  %s29_s19 = sadd.s32 1, %s1034_s14 }
   0xc   : > { %s26_s20 = ssub.s32 %s1038_s15, %s1092_s18  ;;  %p36_p0 = scmp.ne.s32.totalorder %s1034_s14, %s1030_s13 }
   0xd   : > { %p27_p1 = scmp.eq.s32.totalorder %s26_s20, 0  ;;  %p37_p2 = scmp.eq.s32.totalorder %s1038_s15, 0 }
   0xe   : > { %p42_p3 = scmp.ne.s32.totalorder %s1030_s13, %s1026_s12  ;;  %p43_p4 = scmp.eq.s32.totalorder %s1088_s16, 0 }
   0xf   : > { %s1104_s21 = scalar_select %p27_p1, %s1034_s14, %s29_s19  }
  0x10   : > { %p1106_p5 = por %p37_p2, %p36_p0  ;;  %p1112_p6 = por %p43_p4, %p42_p3 }
  0x11   : > { %1347 = sst [smem:[#allocation13_spill]] %s1104_s21  ;;  %p113_p7 = scmp.eq.s32.totalorder %s1088_s16, 1 }
  0x12   : > { %p119_p8 = scmp.eq.s32.totalorder %s763_s17, 1  ;;  %p764_p9 = scmp.ge.s32.totalorder %s1038_s15, 1 }
  0x13   : > { %p126_p10 = scmp.lt.s32.totalorder %s1038_s15, 3  ;;  %p1119_p11 = por %p113_p7, %p36_p0 }
  0x14   : > { %p1123_p12 = por %p119_p8, %p42_p3  ;;  %s1353_s2 = sld [smem:[#allocation15_spill]] }
  0x15   : > { %p1127_p13 = pnand %p764_p9, %p126_p10  ;;  %s1040_s30 = smov [#allocation7]  }
  0x16   : > { %s140_s4 = sshll.u32 %s1040_s30, 4  ;;  %p816_p3 = scmp.lt.s32.totalorder %s1038_s15, 2  ;;  %s141_s4 = int_to_ptr.vmem [resolvable:$true] %s140_s4 }
  0x17   : > { %p800_p1 = pneg %p1127_p13  ;;  %s1141_s5 = sand.u32 1, %s1034_s14  }
  0x18   : > { %p1145_p7 = pnand %p816_p3, %p1106_p5  ;;  %s767_s7 = sshll.u32 %s1141_s5, 4 }
  0x19   : > { %p801_p2 = pnand %p800_p1, %p43_p4  ;;  %s787_s8 = sshll.u32 %s1038_s15, 4 }
  0x1a   : > { %s138_s29 = sshll.u32 %s1353_s2, 4  ;;  %s1355_s0 = sld [smem:[#allocation14_spill]]  ;;  %s139_s29 = int_to_ptr.hbm [resolvable:$true] %s138_s29 }
  0x1b   : > { %803 = dma.hbm_to_vmem [thread:$0]  (!%p801_p2), %s139_s29, 64, %s141_s4, [#allocation6]  }
  0x1c   : > { %s155_s19 = scalar_lea.vmem [#allocation2], %s767_s7  ;;  %s152_s27 = scalar_lea.sflag [#allocation3], %s1141_s5 }
  0x1d   : > { %s163_s20 = sshll.u32 %s155_s19, 4  ;;  %p908_p8 = pneg %p1145_p7  ;;  %s164_s20 = int_to_ptr.vmem [resolvable:$true] %s163_s20 }
  0x20   : > { %s160_s11 = scalar_lea.hbm %s1355_s0, %s787_s8  ;;  %s911_s4 = scalar_lea.hbm %s1355_s0, 32 }
  0x21   : > { %s161_s17 = sshll.u32 %s160_s11, 4  ;;  %s162_s17 = int_to_ptr.hbm [resolvable:$true] %s161_s17 }
  0x22   : > { %s904_s28 = sshra.s32 %s162_s17, 4  ;;  %s905_s28 = int_to_ptr.hbm [resolvable:$true] %s904_s28 }
  0x23   : > { %s906_s22 = scalar_lea.hbm %s905_s28, 16  ;;  %p912_p1 = scmp.lt.s32.totalorder %s905_s28, %s1355_s0 }
  0x24   : > { %p907_p5 = scmp.ne.s32.totalorder %s905_s28, %s906_s22  ;;  %p913_p2 = scmp.lt.s32.totalorder %s911_s4, %s906_s22 }
  0x26   : > { %p909_p9 = pnand %p908_p8, %p907_p5  ;;  %p914_p3 = por %p913_p2, %p912_p1 }
  0x28   : > { %p910_p10 = pneg %p909_p9 }
  0x2a   : > { %p915_p0 = pnand %p914_p3, %p910_p10 }
  0x2c   : > { %918 = shalt.err (!%p915_p0)
}
  0x2d   : > { %s1041_s9 = smov 64   ;;  %s1042_s10 = smov 4  }
  0x2e   : > { %807 = dma.hbm_to_vmem [thread:$0]  (!%p1145_p7), %s162_s17, 256, %s164_s20, %s152_s27, %s1041_s9, %s1041_s9, %s1042_s10  }
  0x2f   : > { %s173_s11 = sand.u32 1, %s1038_s15   ;;  %s770_s19 = sshll.u32 %s1141_s5, 5 }
  0x30   : > { %s788_s29 = sshll.u32 %s1038_s15, 5  ;;  %s177_s30 = scalar_lea.vmem [#allocation5], %s770_s19 }
  0x31   : > { %s185_s2 = sshll.u32 %s177_s30, 4  ;;  %s182_s22 = scalar_lea.hbm %s1342_s1, %s788_s29  ;;  %s186_s2 = int_to_ptr.vmem [resolvable:$true] %s185_s2 }
  0x32   : > { %s183_s4 = sshll.u32 %s182_s22, 4  ;;  %s174_s7 = scalar_lea.sflag [#allocation6], %s173_s11  ;;  %s184_s4 = int_to_ptr.hbm [resolvable:$true] %s183_s4 }
  0x33   : > { %s934_s0 = sshra.s32 %s184_s4, 4  ;;  %s941_s20 = scalar_lea.hbm %s1342_s1, 64  ;;  %s935_s0 = int_to_ptr.hbm [resolvable:$true] %s934_s0 }
  0x34   : > { %s936_s21 = scalar_lea.hbm %s935_s0, 32  ;;  %p942_p10 = scmp.lt.s32.totalorder %s935_s0, %s1342_s1 }
  0x35   : > { %p937_p0 = scmp.ne.s32.totalorder %s935_s0, %s936_s21  ;;  %p943_p1 = scmp.lt.s32.totalorder %s941_s20, %s936_s21 }
  0x37   : > { %p939_p5 = pnand %p937_p0, %p908_p8  ;;  %p944_p2 = por %p943_p1, %p942_p10 }
  0x39   : > { %p940_p9 = pneg %p939_p5 }
  0x3b   : > { %p945_p3 = pnand %p944_p2, %p940_p9 }
  0x3d   : > { %948 = shalt.err (!%p945_p3)
}
  0x3e   : > { %s1043_s10 = smov 128   ;;  %s1044_s11 = smov 8  }
  0x3f   : > { %810 = dma.hbm_to_vmem [thread:$0]  (!%p1145_p7), %s184_s4, 512, %s186_s2, %s174_s7, %s1043_s10, %s1043_s10, %s1044_s11  }
  0x40   : > { %197 = sbr.rel (%p1127_p13) target bundleno = 654 (0x28e), region = 32  ;;  %s1188_s19 = sand.u32 (!%p1127_p13), 1, %s1030_s13  }
  0x41   : > { %s774_s29 = sshll.u32 (!%p1127_p13), %s1188_s19, 4  ;;  %s200_s0 = scalar_lea.sflag (!%p1127_p13), [#allocation3], %s1188_s19 }
  0x42   : > { %s203_s21 = scalar_lea.vmem (!%p1127_p13), [#allocation2], %s774_s29 }
  0x45   : > { %1009 = dma.done.wait (%p1112_p6), %s200_s0, 256  }
  0x46   : > { %1011 = vsyncadd (%p1112_p6), %s200_s0, 4294967040  ;;  %s209_s2 = sand.u32 1, %s1088_s16   ;;  %s775_s26 = sshll.u32 %s1188_s19, 5 }
  0x47   : > { %s210_s6 = scalar_lea.sflag [#allocation6], %s209_s2  ;;  %s1200_s30 = scalar_lea.vmem [#allocation5], %s775_s26 }
  0x48   : > { %1013 = dma.done.wait (%p1112_p6), %s210_s6, 512  }
  0x49   : > { %1015 = vsyncadd (%p1112_p6), %s210_s6, 4294966784 }
  0x4a   : > { %1017 = dma.done.wait (%p43_p4), [#allocation6], 64  }
  0x4b   : > { %1019 = vsyncadd (%p43_p4), [#allocation6], 4294967232  ;;  %v1210_v0 = vld [vmem:[%s203_s21] sm:$0xf]  ;;  %v1212_v1 = vld [vmem:[%s203_s21 + $0x4] sm:$0xf] }
  0x4c   : > { %v1214_v2 = vld [vmem:[%s203_s21 + $0x8] sm:$0xf]  ;;  %v260_v3 = vunpack.c.l.bf16 %v1210_v0  ;;  %327 = vmatpush.bf16.xpose.msra.mxu0 %v1210_v0  ;;  %v261_v4 = vunpack.c.l.bf16 %v1212_v1  ;;  %358 = vmatpush.bf16.xpose.msra.mxu1 %v1212_v1  ;;  %v1221_v6 = vld [vmem:[%s203_s21 + $0xc] sm:$0xf]  ;;  %v259_v7 = vld [vmem:[#allocation7] sm:$0xf] }
  0x4d   : > { %v262_v5 = vunpack.c.l.bf16 %v1214_v2  ;;  %389 = vmatpush.bf16.xpose.msra.mxu2 %v1214_v2  ;;  %v263_v8 = vunpack.c.l.bf16 %v1221_v6  ;;  %420 = vmatpush.bf16.xpose.msra.mxu3 %v1221_v6  ;;  %v265_v9 = vrot.slane %v259_v7, 1  ;;  %v268_v10 = vperm.slane %v259_v7, 0  ;;  %s246_s23 = scalar_lea.vmem [#allocation8], %s775_s26  ;;  %s789_s8 = sshll.u32 %s1088_s16, 5 }
  0x4e   : > { %v266_v11 = vrot.slane %v259_v7, 2  ;;  %v267_v12 = vrot.slane %v259_v7, 3  ;;  %vm512_vm14 = vcmask 64512   ;;  %s654_s4 = scalar_lea.hbm %s1344_s3, %s789_s8  ;;  %s655_s7 = sshll.u32 %s246_s23, 4  ;;  %s656_s7 = int_to_ptr.vmem [resolvable:$true] %s655_s7 }
  0x4f   : > { %v269_v13 = vperm.slane %v265_v9, 0  ;;  %v276_v14 = vmul.f32 %v268_v10, %v260_v3  ;;  %v280_v15 = vmul.f32 %v268_v10, %v261_v4  ;;  %v284_v16 = vmul.f32 %v268_v10, %v262_v5  ;;  %s657_s5 = sshll.u32 %s654_s4, 4  ;;  %s643_s17 = scalar_lea.sflag [#allocation4], %s1188_s19  ;;  %s658_s5 = int_to_ptr.hbm [resolvable:$true] %s657_s5 }
  0x50   : > { %v288_v17 = vmul.f32 %v268_v10, %v263_v8  ;;  %v270_v18 = vperm.slane %v266_v11, 0  ;;  %v271_v19 = vperm.slane %v267_v12, 0  ;;  %s978_s20 = sshra.s32 %s658_s5, 4  ;;  %s984_s10 = scalar_lea.hbm %s1344_s3, 64  ;;  %s979_s20 = int_to_ptr.hbm [resolvable:$true] %s978_s20 }
  0x51   : > { %v277_v20 = vmul.f32 %v269_v13, %v260_v3  ;;  %v292_v21 = vpack.c.bf16 %v276_v14, %v276_v14  ;;  %v281_v22 = vmul.f32 %v269_v13, %v261_v4  ;;  %v296_v23 = vpack.c.bf16 %v280_v15, %v280_v15  ;;  %s980_s27 = scalar_lea.hbm %s979_s20, 32  ;;  %p985_p7 = scmp.lt.s32.totalorder %s979_s20, %s1344_s3 }
  0x52   : > { %v285_v24 = vmul.f32 %v269_v13, %v262_v5  ;;  %v300_v25 = vpack.c.bf16 %v284_v16, %v284_v16  ;;  %v289_v26 = vmul.f32 %v269_v13, %v263_v8  ;;  %v304_v27 = vpack.c.bf16 %v288_v17, %v288_v17  ;;  %p981_p4 = scmp.ne.s32.totalorder %s979_s20, %s980_s27  ;;  %p986_p8 = scmp.lt.s32.totalorder %s984_s10, %s980_s27 }
  0x53   : > { %v293_v28 = vpack.c.bf16 %v277_v20, %v277_v20  ;;  %v312_v29 = vunpack.c.l.b16 %v292_v21  ;;  %v297_v30 = vpack.c.bf16 %v281_v22, %v281_v22  ;;  %v343_v31 = vunpack.c.l.b16 %v296_v23  ;;  %v255_v21 = vld [vmem:[%s1200_s30] sm:$0xff] }
  0x54   : > { %v301_v32 = vpack.c.bf16 %v285_v24, %v285_v24  ;;  %v374_v33 = vunpack.c.l.b16 %v300_v25  ;;  %v305_v34 = vpack.c.bf16 %v289_v26, %v289_v26  ;;  %v405_v35 = vunpack.c.l.b16 %v304_v27  ;;  %v1234_v25 = vld [vmem:[%s1200_s30 + $0x8] sm:$0xff]  ;;  %v1237_v26 = vld [vmem:[%s1200_s30 + $0x10] sm:$0xff]  ;;  %p982_p6 = pnand %p981_p4, %p1119_p11  ;;  %p987_p0 = por %p986_p8, %p985_p7 }
  0x55   : > { %v313_v36 = vunpack.c.l.b16 %v293_v28  ;;  %v344_v37 = vunpack.c.l.b16 %v297_v30  ;;  %v278_v44 = vmul.f32 %v270_v18, %v260_v3  ;;  %v279_v45 = vmul.f32 %v271_v19, %v260_v3 }
  0x56   : > { %v375_v38 = vunpack.c.l.b16 %v301_v32  ;;  %v406_v39 = vunpack.c.l.b16 %v305_v34  ;;  %v282_v46 = vmul.f32 %v270_v18, %v261_v4  ;;  %v283_v47 = vmul.f32 %v271_v19, %v261_v4  ;;  %p983_p13 = pneg %p982_p6 }
  0x57   : > { %v316_v40 = vpack.c.b16 %v313_v36, %v312_v29  ;;  %v347_v41 = vpack.c.b16 %v344_v37, %v343_v31  ;;  %v286_v48 = vmul.f32 %v270_v18, %v262_v5  ;;  %v287_v49 = vmul.f32 %v271_v19, %v262_v5 }
  0x58   : > { %v378_v42 = vpack.c.b16 %v375_v38, %v374_v33  ;;  %v409_v43 = vpack.c.b16 %v406_v39, %v405_v35  ;;  %v290_v50 = vmul.f32 %v270_v18, %v263_v8  ;;  %v291_v51 = vmul.f32 %v271_v19, %v263_v8  ;;  %v1243_v33 = vld [vmem:[%s1200_s30 + $0x18] sm:$0xff]  ;;  %p988_p5 = pnand %p987_p0, %p983_p13 }
  0x59   : > { %328 = vmatmul.bf16.vlgmr.msra.gmra.mxu0 %v316_v40  ;;  %359 = vmatmul.bf16.vlgmr.msra.gmra.mxu1 %v347_v41  ;;  %v294_v52 = vpack.c.bf16 %v278_v44, %v278_v44  ;;  %v295_v53 = vpack.c.bf16 %v279_v45, %v279_v45  ;;  %v298_v54 = vpack.c.bf16 %v282_v46, %v282_v46  ;;  %vm480_vm2 = vcmp.eq.s32.totalorder %v255_v21, 1 }
  0x5a   : > { %390 = vmatmul.bf16.vlgmr.msra.gmra.mxu2 %v378_v42  ;;  %421 = vmatmul.bf16.vlgmr.msra.gmra.mxu3 %v409_v43  ;;  %v299_v55 = vpack.c.bf16 %v283_v47, %v283_v47  ;;  %v302_v56 = vpack.c.bf16 %v286_v48, %v286_v48  ;;  %v303_v57 = vpack.c.bf16 %v287_v49, %v287_v49  ;;  %vm481_vm4 = vcmp.eq.s32.totalorder %v1234_v25, 1 }
  0x5b   : > { %v306_v58 = vpack.c.bf16 %v290_v50, %v290_v50  ;;  %v307_v59 = vpack.c.bf16 %v291_v51, %v291_v51  ;;  %v314_v60 = vunpack.c.l.b16 %v294_v52  ;;  %v315_v61 = vunpack.c.l.b16 %v295_v53 }
  0x5c   : > { %v345_v62 = vunpack.c.l.b16 %v298_v54  ;;  %v346_v63 = vunpack.c.l.b16 %v299_v55  ;;  %v376_v3 = vunpack.c.l.b16 %v302_v56  ;;  %v377_v4 = vunpack.c.l.b16 %v303_v57 }
  0x5d   : > { %v407_v7 = vunpack.c.l.b16 %v306_v58  ;;  %v408_v9 = vunpack.c.l.b16 %v307_v59  ;;  %v317_v10 = vpack.c.b16 %v315_v61, %v314_v60  ;;  %vm482_vm5 = vcmp.eq.s32.totalorder %v1237_v26, 1 }
  0x5e   : > { %v348_v5 = vpack.c.b16 %v346_v63, %v345_v62  ;;  %v379_v8 = vpack.c.b16 %v377_v4, %v376_v3  ;;  %vm489_vm6 = vcmp.eq.s32.totalorder %v1234_v25, 2  ;;  %vm488_vm8 = vcmp.eq.s32.totalorder %v255_v21, 2 }
  0x5f   : > { %v410_v11 = vpack.c.b16 %v408_v9, %v407_v7  ;;  %vm496_vm10 = vcmp.eq.s32.totalorder %v255_v21, 3  ;;  %vm490_vm11 = vcmp.eq.s32.totalorder %v1237_v26, 2  ;;  %vm504_vm13 = vcmp.eq.s32.totalorder %v255_v21, 4 }
  0x69   : > { %333 = vmatmul.bf16.gmra.mxu0 %v317_v10  ;;  %364 = vmatmul.bf16.gmra.mxu1 %v348_v5 }
  0x6a   : > { %395 = vmatmul.bf16.gmra.mxu2 %v379_v8  ;;  %426 = vmatmul.bf16.gmra.mxu3 %v410_v11 }
  0xd6   : > { %v329_v12 = vpop.f32.mrf.mxu0  ;;  %v360_v13 = vpop.f32.mrf.mxu1 }
  0xd7   : > { %v448_v18 = vmul.f32 0.2, %v329_v12  ;;  %vm432_vm0 = vcmp.gt.f32.partialorder %v329_v12, 0.0  ;;  %v452_v22 = vmul.f32 0.2, %v360_v13  ;;  %vm436_vm1 = vcmp.gt.f32.partialorder %v360_v13, 0.0 }
  0xd9   : > { %v464_v28 = vsel %vm432_vm0, %v329_v12, %v448_v18  ;;  %v468_v29 = vsel %vm436_vm1, %v360_v13, %v452_v22  ;;  %vm505_vm0 = vcmp.eq.s32.totalorder %v1234_v25, 4 }
  0xda   : > { %v484_v32 = vsel %vm480_vm2, %v464_v28, -9e+15  ;;  %v485_v35 = vsel %vm481_vm4, %v468_v29, -9e+15 }
  0xdd   : > { %v391_v14 = vpop.f32.mrf.mxu2  ;;  %v1226_v15 = vpop.f32.mrf.mxu3 }
  0xde   : > { %v331_v16 = vpop.f32.mrf.mxu0  ;;  %v362_v17 = vpop.f32.mrf.mxu1  ;;  %vm440_vm12 = vcmp.gt.f32.partialorder %v391_v14, 0.0  ;;  %v456_v38 = vmul.f32 0.2, %v391_v14  ;;  %vm444_vm15 = vcmp.gt.f32.partialorder %v1226_v15, 0.0  ;;  %v460_v39 = vmul.f32 0.2, %v1226_v15 }
  0xdf   : > { %v449_v27 = vmul.f32 0.2, %v331_v16  ;;  %vm433_vm3 = vcmp.gt.f32.partialorder %v331_v16, 0.0  ;;  %v453_v31 = vmul.f32 0.2, %v362_v17  ;;  %vm437_vm9 = vcmp.gt.f32.partialorder %v362_v17, 0.0 }
  0xe0   : > { %v472_v52 = vsel %vm440_vm12, %v391_v14, %v456_v38  ;;  %v476_v59 = vsel %vm444_vm15, %v1226_v15, %v460_v39  ;;  %vm1356_vm15 = vcmp.eq.s32.totalorder %v1243_v33, 1 }
  0xe1   : > { %v465_v34 = vsel %vm433_vm3, %v331_v16, %v449_v27  ;;  %v469_v43 = vsel %vm437_vm9, %v362_v17, %v453_v31  ;;  %vm497_vm9 = vcmp.eq.s32.totalorder %v1234_v25, 3  ;;  %v486_v58 = vsel %vm482_vm5, %v472_v52, -9e+15 }
  0xe2   : > { %v492_v45 = vsel %vm488_vm8, %v465_v34, %v484_v32  ;;  %vm498_vm8 = vcmp.eq.s32.totalorder %v1237_v26, 3  ;;  %v493_v55 = vsel %vm489_vm6, %v469_v43, %v485_v35  ;;  %v487_v14 = vsel %vm1356_vm15, %v476_v59, -9e+15 }
  0xe5   : > { %v1228_v19 = vpop.f32.mrf.mxu2  ;;  %v1230_v20 = vpop.f32.mrf.mxu3 }
  0xe6   : > { %v334_v23 = vpop.f32.mrf.mxu0  ;;  %v365_v24 = vpop.f32.mrf.mxu1  ;;  %vm441_vm2 = vcmp.gt.f32.partialorder %v1228_v19, 0.0  ;;  %v457_v46 = vmul.f32 0.2, %v1228_v19  ;;  %vm445_vm6 = vcmp.gt.f32.partialorder %v1230_v20, 0.0  ;;  %v461_v3 = vmul.f32 0.2, %v1230_v20 }
  0xe7   : > { %v450_v30 = vmul.f32 0.2, %v334_v23  ;;  %vm434_vm7 = vcmp.gt.f32.partialorder %v334_v23, 0.0  ;;  %vm438_vm3 = vcmp.gt.f32.partialorder %v365_v24, 0.0  ;;  %v454_v47 = vmul.f32 0.2, %v365_v24 }
  0xe8   : > { %v473_v56 = vsel %vm441_vm2, %v1228_v19, %v457_v46  ;;  %v477_v15 = vsel %vm445_vm6, %v1230_v20, %v461_v3  ;;  %vm564_vm2 = vcmask 1043456  }
  0xe9   : > { %v466_v40 = vsel %vm434_vm7, %v334_v23, %v450_v30  ;;  %v470_v57 = vsel %vm438_vm3, %v365_v24, %v454_v47  ;;  %v494_v9 = vsel %vm490_vm11, %v473_v56, %v486_v58  ;;  %vm491_vm11 = vcmp.eq.s32.totalorder %v1243_v33, 2 }
  0xea   : > { %v500_v51 = vsel %vm496_vm10, %v466_v40, %v492_v45  ;;  %vm506_vm10 = vcmp.eq.s32.totalorder %v1237_v26, 4  ;;  %v501_v10 = vsel %vm497_vm9, %v470_v57, %v493_v55  ;;  %v495_v21 = vsel %vm491_vm11, %v477_v15, %v487_v14 }
  0xeb   : > { %v604_v20 = vsel %vm564_vm2, %v1214_v2, 0  ;;  %v623_v25 = vsel %vm564_vm2, %v1221_v6, 0  ;;  %v566_v26 = vsel %vm564_vm2, %v1210_v0, 0  ;;  %v585_v27 = vsel %vm564_vm2, %v1212_v1, 0 }
  0xec   : > { %613 = vmatpush.bf16.msrb.mxu2 %v604_v20  ;;  %632 = vmatpush.bf16.msrb.mxu3 %v623_v25 }
  0xed   : > { %v396_v36 = vpop.f32.mrf.mxu2  ;;  %v427_v37 = vpop.f32.mrf.mxu3  ;;  %575 = vmatpush.bf16.msrb.mxu0 %v566_v26  ;;  %594 = vmatpush.bf16.msrb.mxu1 %v585_v27 }
  0xee   : > { %v336_v41 = vpop.f32.mrf.mxu0  ;;  %v367_v42 = vpop.f32.mrf.mxu1  ;;  %v458_v48 = vmul.f32 0.2, %v396_v36  ;;  %vm442_vm4 = vcmp.gt.f32.partialorder %v396_v36, 0.0  ;;  %v462_v7 = vmul.f32 0.2, %v427_v37 }
  0xef   : > { %vm435_vm1 = vcmp.gt.f32.partialorder %v336_v41, 0.0  ;;  %v451_v44 = vmul.f32 0.2, %v336_v41  ;;  %v455_v49 = vmul.f32 0.2, %v367_v42  ;;  %vm439_vm7 = vcmp.gt.f32.partialorder %v367_v42, 0.0 }
  0xf0   : > { %v474_v60 = vsel %vm442_vm4, %v396_v36, %v458_v48 }
  0xf1   : > { %v467_v50 = vsel %vm435_vm1, %v336_v41, %v451_v44  ;;  %v471_v61 = vsel %vm439_vm7, %v367_v42, %v455_v49  ;;  %v502_v11 = vsel %vm498_vm8, %v474_v60, %v494_v9  ;;  %vm499_vm1 = vcmp.eq.s32.totalorder %v1243_v33, 3 }
  0xf2   : > { %v508_v53 = vsel %vm504_vm13, %v467_v50, %v500_v51  ;;  %vm446_vm13 = vcmp.gt.f32.partialorder %v427_v37, 0.0  ;;  %v509_v12 = vsel %vm505_vm0, %v471_v61, %v501_v10  ;;  %vm507_vm0 = vcmp.eq.s32.totalorder %v1243_v33, 4 }
  0xf3   : > { %v513_v54 = vsel %vm512_vm14, %v508_v53, -inf  ;;  %v478_v17 = vsel %vm446_vm13, %v427_v37, %v462_v7  ;;  %v516_v18 = vsel %vm512_vm14, %v509_v12, -inf }
  0xf4   : > { %514 = vmax.xlane.f32.xlu1 %v513_v54  ;;  %v503_v22 = vsel %vm499_vm1, %v478_v17, %v495_v21 }
  0xf5   : > { %v398_v62 = vpop.f32.mrf.mxu2  ;;  %v429_v63 = vpop.f32.mrf.mxu3 }
  0xf6   : > { %vm443_vm12 = vcmp.gt.f32.partialorder %v398_v62, 0.0  ;;  %v459_v4 = vmul.f32 0.2, %v398_v62  ;;  %v463_v5 = vmul.f32 0.2, %v429_v63  ;;  %vm447_vm5 = vcmp.gt.f32.partialorder %v429_v63, 0.0 }
  0xf8   : > { %v475_v8 = vsel %vm443_vm12, %v398_v62, %v459_v4  ;;  %v479_v19 = vsel %vm447_vm5, %v429_v63, %v463_v5 }
  0xf9   : > { %v510_v13 = vsel %vm506_vm10, %v475_v8, %v502_v11  ;;  %v511_v23 = vsel %vm507_vm0, %v479_v19, %v503_v22 }
  0xfa   : > { %v519_v16 = vsel %vm512_vm14, %v510_v13, -inf  ;;  %v522_v24 = vsel %vm512_vm14, %v511_v23, -inf }
  0xfb   : > { %520 = vmax.xlane.f32.xlu0 %v519_v16 }
  0xfc   : > { %517 = vmax.xlane.f32.xlu1 %v516_v18 }
 0x103   : > { %523 = vmax.xlane.f32.xlu0 %v522_v24 }
 0x167   : > { %v515_v28 = vpop.xlane.xlu1 %514 }
 0x168   : > { %v525_v29 = vsub.f32 %v508_v53, %v515_v28 }
 0x16a   : > { %v529_v30 = vmul.f32 1.442695, %v525_v29 }
 0x16c   : > { %858 = vpow2.f32 %v529_v30 }
 0x16e   : > { %v521_v31 = vpop.xlane.xlu0 %520 }
 0x16f   : > { %v527_v32 = vsub.f32 %v510_v13, %v521_v31  ;;  %v518_v33 = vpop.xlane.xlu1 %517 }
 0x170   : > { %v526_v34 = vsub.f32 %v509_v12, %v518_v33 }
 0x171   : > { %v533_v35 = vmul.f32 1.442695, %v527_v32 }
 0x172   : > { %v859_v2 = vpop.eup %858  ;;  %v531_v36 = vmul.f32 1.442695, %v526_v34 }
 0x173   : > { %860 = vpow2.f32 %v533_v35  ;;  %v537_v0 = vsel %vm512_vm14, %v859_v2, 0.0 }
 0x174   : > { %862 = vpow2.f32 %v531_v36  ;;  %538 = vadd.xlane.f32.xlu0 %v537_v0 }
 0x176   : > { %v524_v1 = vpop.xlane.xlu0 %523 }
 0x177   : > { %v528_v6 = vsub.f32 %v511_v23, %v524_v1 }
 0x179   : > { %v861_v37 = vpop.eup %860  ;;  %v535_v38 = vmul.f32 1.442695, %v528_v6 }
 0x17a   : > { %v863_v39 = vpop.eup %862  ;;  %v543_v40 = vsel %vm512_vm14, %v861_v37, 0.0 }
 0x17b   : > { %864 = vpow2.f32 %v535_v38  ;;  %544 = vadd.xlane.f32.xlu2 %v543_v40  ;;  %v540_v41 = vsel %vm512_vm14, %v863_v39, 0.0 }
 0x17c   : > { %541 = vadd.xlane.f32.xlu1 %v540_v41 }
 0x181   : > { %v865_v42 = vpop.eup %864 }
 0x182   : > { %v546_v43 = vsel %vm512_vm14, %v865_v42, 0.0 }
 0x183   : > { %547 = vadd.xlane.f32.xlu2 %v546_v43 }
 0x1e7   : > { %v539_v44 = vpop.xlane.xlu0 %538 }
 0x1e8   : > { %866 = vrcp.f32 %v539_v44 }
 0x1ee   : > { %v867_v45 = vpop.eup %866  ;;  %v545_v46 = vpop.xlane.xlu2 %544 }
 0x1ef   : > { %v553_v47 = vmul.f32 %v867_v45, %v859_v2  ;;  %868 = vrcp.f32 %v545_v46  ;;  %v542_v48 = vpop.xlane.xlu1 %541 }
 0x1f0   : > { %870 = vrcp.f32 %v542_v48 }
 0x1f1   : > { %v557_v49 = vpack.c.bf16 %v553_v47, %v553_v47 }
 0x1f3   : > { %778 = vmatmul.msk.bf16.vlgmr.msrb.gmra.mxu0 %vm512_vm14, %v557_v49 }
 0x1f5   : > { %v869_v50 = vpop.eup %868 }
 0x1f6   : > { %v871_v51 = vpop.eup %870  ;;  %v555_v52 = vmul.f32 %v869_v50, %v861_v37  ;;  %v548_v53 = vpop.xlane.xlu2 %547 }
 0x1f7   : > { %v554_v54 = vmul.f32 %v871_v51, %v863_v39  ;;  %872 = vrcp.f32 %v548_v53 }
 0x1f8   : > { %v559_v55 = vpack.c.bf16 %v555_v52, %v555_v52 }
 0x1f9   : > { %v558_v56 = vpack.c.bf16 %v554_v54, %v554_v54 }
 0x1fa   : > { %780 = vmatmul.msk.bf16.vlgmr.msrb.gmra.mxu2 %vm512_vm14, %v559_v55 }
 0x1fb   : > { %779 = vmatmul.msk.bf16.vlgmr.msrb.gmra.mxu1 %vm512_vm14, %v558_v56 }
 0x1fd   : > { %v873_v57 = vpop.eup %872 }
 0x1fe   : > { %v556_v58 = vmul.f32 %v873_v57, %v865_v42 }
 0x200   : > { %v560_v59 = vpack.c.bf16 %v556_v58, %v556_v58 }
 0x202   : > { %781 = vmatmul.msk.bf16.vlgmr.msrb.gmra.mxu3 %vm512_vm14, %v560_v59 }
 0x270   : > { %v577_v60 = vpop.f32.mrf.mxu0 }
 0x271   : > { %638 = vst [vmem:[%s246_s23] sm:$0xff] %v577_v60 }
 0x278   : > { %v579_v61 = vpop.f32.mrf.mxu0  ;;  %v596_v62 = vpop.f32.mrf.mxu1 }
 0x279   : > { %639 = vst [vmem:[%s246_s23 + $0x8] sm:$0xff] %v596_v62 }
 0x27d   : > { %v615_v63 = vpop.f32.mrf.mxu2 }
 0x27e   : > { %640 = vst [vmem:[%s246_s23 + $0x10] sm:$0xff] %v615_v63 }
 0x280   : > { %v598_v3 = vpop.f32.mrf.mxu1 }
 0x285   : > { %v617_v4 = vpop.f32.mrf.mxu2  ;;  %v634_v7 = vpop.f32.mrf.mxu3 }
 0x286   : > { %641 = vst [vmem:[%s246_s23 + $0x18] sm:$0xff] %v634_v7 }
 0x287   : > { %991 = shalt.err (!%p988_p5)
}
 0x288   : > { %s1045_s19 = smov 128   ;;  %s1046_s0 = smov 8  }
 0x289   : > { %798 = dma.vmem_to_hbm [thread:$0]  (%p1119_p11), %s656_s7, 512, %s658_s5, %s643_s17, %s1045_s19, %s1045_s19, %s1046_s0  }
 0x28d   : > { %v636_v9 = vpop.f32.mrf.mxu3 }
 0x28e PF: > { %s672_s21 = sand.u32 1, %s1026_s12   ;;  %p1357_p9 = scmp.ge.s32.totalorder %s1038_s15, 2 }
 0x28f   : > { %s673_s2 = scalar_lea.sflag [#allocation4], %s672_s21 }
 0x290   : > { %p812_p10 = pnand %p1357_p9, %p1123_p12 }
 0x292   : > { %p813_p1 = pneg %p812_p10 }
 0x294   : > { %1021 = dma.done.wait (%p813_p1), %s673_s2, 512  }
 0x295   : > { %1023 = vsyncadd (%p813_p1), %s673_s2, 4294966784  ;;  %s1358_s26 = sld [smem:[#allocation13_spill]]  ;;  %p19_p2 = scmp.ge.s32.totalorder %s1092_s18, 4  }
 0x296   : > { %s1359_s12 = smov %s1030_s13  ;;  %s1360_s13 = smov %s1034_s14 }
 0x297   : > { %s1362_s15 = smov %s1092_s18  ;;  %21 = sbr.rel (!%p19_p2) target bundleno = 10 (0xa), region = 94 }
 0x29b   : > { %s1361_s14 = smov %s1358_s26 }
 0x29c   :  { %679 = vsyncpa [#allocation3], 1 }
 0x29d   :  { %681 = vsyncpa [#allocation3 + $0x1], 1 }
 0x29e   :  { %682 = vsyncpa [#allocation6], 1 }
 0x29f   :  { %684 = vsyncpa [#allocation6 + $0x1], 1 }
 0x2a0   :  { %685 = vsyncpa [#allocation4], 1 }
 0x2a1   :  { %687 = vsyncpa [#allocation4 + $0x1], 1 }

</bundles_post_ra>
